<compile_context>
chip_gen: v7x
topology: tpu7x:2x2x1
jax: 0.10.0
libtpu: 0.0.40
codegen_flags: <defaults>
</compile_context>

<pallas_src>
import functools

import jax
import jax.numpy as jnp
from jax.experimental import pallas as pl
from jax.experimental.pallas import tpu as pltpu


# --------------------------------------------------------------------------
# Pallas kernel: zero-prev-state custom_GRU update + transform_z0 MLP.
# --------------------------------------------------------------------------
def _encoder_kernel(
    x_ref,                      # (tm, D) activation row tile
    w1_ref, b1_ref,             # fused first layer [update | new_state] x-rows: (D, 2H), (1, 2H)
    w2u_ref, b2u_ref,           # update gate second layer: (H, L), (1, L)
    w2n_ref, b2n_ref,           # new_state_net second layer (fused mu|std): (H, 2L), (1, 2L)
    wt1_ref, bt1_ref,           # transform_z0 first layer: (2L, T), (1, T)
    wt2_ref, bt2_ref,           # transform_z0 second layer (fused mu|std): (T, 2Z), (1, 2Z)
    z0_ref,                     # (tm, 2Z) fused output [z0_mu | z0_std]
    *, latent_dim, z0_dim, n_gru):
  L, Z, H = latent_dim, z0_dim, n_gru

  x = x_ref[...]                               # (tm, D)
  D = x.shape[-1]
  mask = x[:, D // 2:]                         # (tm, L)  (requires D // 2 == L)

  def dot(a, b):
    return jnp.dot(a, b, preferred_element_type=jnp.float32)

  # ---- fused first layer: update gate + new-state net (x-contribution only;
  #      the prev-state rows multiply exact zeros in this forward path) ----
  h = jnp.tanh(dot(x, w1_ref[...]) + b1_ref[...])          # (tm, 2H)
  h_u = h[:, :H]
  h_n = h[:, H:]

  # ---- update gate (reset gate is dropped: it only multiplies zeros) ----
  u = jax.nn.sigmoid(dot(h_u, w2u_ref[...]) + b2u_ref[...])  # (tm, L)

  # ---- new-state net second layer, fused [new_state | new_state_std] ----
  st = dot(h_n, w2n_ref[...]) + b2n_ref[...]                 # (tm, 2L)
  col = jax.lax.broadcasted_iota(jnp.int32, st.shape, 1)
  st = jnp.where(col >= L, jnp.abs(st), st)                  # |new_state_std|

  # new_y      = mask * (1-u) * new_state        (+ u*y_mu, (1-mask)*y_mu == 0)
  # new_y_std  = |mask * (1-u) * |new_state_std||
  gate = mask * (1.0 - u)                                    # (tm, L)
  y_cat = jnp.concatenate([gate, gate], axis=-1) * st        # cat([new_y, new_y_std])
  y_cat = jnp.where(col >= L, jnp.abs(y_cat), y_cat)         # final abs on std half

  # ---- transform_z0 ----
  h_t = jnp.tanh(dot(y_cat, wt1_ref[...]) + bt1_ref[...])    # (tm, T)
  z0 = dot(h_t, wt2_ref[...]) + bt2_ref[...]                 # (tm, 2Z) fused [mu | std]
  colz = jax.lax.broadcasted_iota(jnp.int32, z0.shape, 1)
  z0_ref[...] = jnp.where(colz >= Z, jnp.abs(z0), z0)        # |z0_std| on std half


# --------------------------------------------------------------------------
# Parameter init (deterministic, synthetic; mirrors the nn.Linear shapes).
# --------------------------------------------------------------------------
def init_params(key, latent_dim, input_dim, n_gru, z0_dim, t_hidden=100):
  L, D, H, T, Z = latent_dim, input_dim, n_gru, t_hidden, z0_dim
  ks = jax.random.split(key, 16)

  def lin(kw, kb, fan_in, fan_out):
    w = 0.1 * jax.random.normal(kw, (fan_in, fan_out), jnp.float32)
    b = 0.1 * jax.random.normal(kb, (1, fan_out), jnp.float32)
    return w, b

  p = {}
  p["w1u"], p["b1u"] = lin(ks[0], ks[1], 2 * L + D, H)      # update gate L1
  p["w2u"], p["b2u"] = lin(ks[2], ks[3], H, L)              # update gate L2
  p["w1r"], p["b1r"] = lin(ks[4], ks[5], 2 * L + D, H)      # reset gate L1 (unused by kernel)
  p["w2r"], p["b2r"] = lin(ks[6], ks[7], H, L)              # reset gate L2 (unused by kernel)
  p["w1n"], p["b1n"] = lin(ks[8], ks[9], 2 * L + D, H)      # new_state_net L1
  p["w2n"], p["b2n"] = lin(ks[10], ks[11], H, 2 * L)        # new_state_net L2 (kept fused)
  p["wt1"], p["bt1"] = lin(ks[12], ks[13], 2 * L, T)        # transform_z0 L1
  p["wt2"], p["bt2"] = lin(ks[14], ks[15], T, 2 * Z)        # transform_z0 L2 (kept fused)
  return p


# --------------------------------------------------------------------------
# Wrapper: Encoder_odernn.forward for the single-timepoint path.
# --------------------------------------------------------------------------
def encoder_odernn_forward(data, tps, params, *, latent_dim, z0_dim,
                           block_rows=None):
  n_traj, n_tps, n_dim = data.shape
  assert tps.shape[0] == 1, "only the len(tps)==1 path is implemented"
  L, Z = latent_dim, z0_dim
  # masked_update: second half of x is the observation mask; broadcasting in
  # the PyTorch code requires n_dim // 2 == latent_dim.
  assert n_dim // 2 == L
  H = params["w2u"].shape[0]

  x = data[:, 0, :].astype(jnp.float32)                     # (n_traj, n_dim)

  # Fuse the x-rows of the update-gate / new-state first layers (prev state is
  # exactly zero in this path; the reset gate drops out entirely).
  w1 = jnp.concatenate([params["w1u"][2 * L:, :],
                        params["w1n"][2 * L:, :]], axis=1)  # (D, 2H)
  b1 = jnp.concatenate([params["b1u"], params["b1n"]], axis=1)  # (1, 2H)

  def _round_up(a, b):
    return (a + b - 1) // b * b

  if block_rows is None:
    block_rows = min(512, _round_up(n_traj, 8))
  block_rows = _round_up(block_rows, 8)
  n_pad = _round_up(n_traj, block_rows)
  if n_pad != n_traj:
    x = jnp.pad(x, ((0, n_pad - n_traj), (0, 0)))

  grid = (n_pad // block_rows,)
  row_spec = pl.BlockSpec((block_rows, n_dim), lambda i: (i, 0))
  out_spec = pl.BlockSpec((block_rows, 2 * Z), lambda i: (i, 0))

  def wspec(a):
    return pl.BlockSpec(a.shape, lambda i: (0, 0))

  weights = [w1, b1,
             params["w2u"], params["b2u"],
             params["w2n"], params["b2n"],
             params["wt1"], params["bt1"],
             params["wt2"], params["bt2"]]

  kernel = functools.partial(_encoder_kernel, latent_dim=L, z0_dim=Z, n_gru=H)

  z0 = pl.pallas_call(
      kernel,
      out_shape=jax.ShapeDtypeStruct((n_pad, 2 * Z), jnp.float32),
      grid_spec=pltpu.PrefetchScalarGridSpec(
          num_scalar_prefetch=0,
          grid=grid,
          in_specs=[row_spec] + [wspec(w) for w in weights],
          out_specs=out_spec),
      compiler_params=pltpu.CompilerParams(
          dimension_semantics=("parallel",),
          vmem_limit_bytes=32 * 1024 * 1024),
  )(x, *weights)

  z0 = z0[:n_traj]
  # restore the leading singleton axis of the PyTorch output shapes
  z0_mu = z0[:, :Z].reshape(1, n_traj, Z)
  z0_std = z0[:, Z:].reshape(1, n_traj, Z)
  return z0_mu, z0_std


# --------------------------------------------------------------------------
# Pure-JAX reference (full original math, incl. the reset gate) for checking.
# --------------------------------------------------------------------------
def _reference(data, params, latent_dim, z0_dim):
  p = params
  L, Z = latent_dim, z0_dim
  n_traj, _, n_dim = data.shape
  x = data[:, 0, :]
  mask = x[:, n_dim // 2:]
  y_mu = jnp.zeros((n_traj, L), jnp.float32)
  y_std = jnp.zeros((n_traj, L), jnp.float32)
  cat = jnp.concatenate([y_mu, y_std, x], -1)
  u = jax.nn.sigmoid(jnp.tanh(cat @ p["w1u"] + p["b1u"]) @ p["w2u"] + p["b2u"])
  r = jax.nn.sigmoid(jnp.tanh(cat @ p["w1r"] + p["b1r"]) @ p["w2r"] + p["b2r"])
  cat2 = jnp.concatenate([y_mu * r, y_std * r, x], -1)
  h = jnp.tanh(cat2 @ p["w1n"] + p["b1n"])
  ns_full = h @ p["w2n"] + p["b2n"]
  ns, nss = ns_full[:, :L], jnp.abs(ns_full[:, L:])
  ny = (1 - u) * ns + u * y_mu
  nys = (1 - u) * nss + u * y_std
  ny = mask * ny + (1 - mask) * y_mu
  nys = jnp.abs(mask * nys + (1 - mask) * y_std)
  ht = jnp.tanh(jnp.concatenate([ny, nys], -1) @ p["wt1"] + p["bt1"])
  z = ht @ p["wt2"] + p["bt2"]
  z0_mu, z0_std = z[:, :Z], jnp.abs(z[:, Z:])
  return z0_mu.reshape(1, n_traj, Z), z0_std.reshape(1, n_traj, Z)


if __name__ == "__main__":
  latent_dim = 8
  input_dim = 16        # 8 data features + 8 mask features (concatenated)
  n_gru = 10            # hidden units of the GRU gate MLPs
  z0_dim = latent_dim
  n_traj = 24
  n_tps = 1

  key = jax.random.PRNGKey(0)
  k_data, k_mask, k_params = jax.random.split(key, 3)

  feats = jax.random.normal(k_data, (n_traj, n_tps, input_dim // 2), jnp.float32)
  obs_mask = (jax.random.uniform(k_mask, (n_traj, n_tps, input_dim // 2)) > 0.3
              ).astype(jnp.float32)
  data = jnp.concatenate([feats * obs_mask, obs_mask], axis=-1)  # (n_traj, 1, D)
  tps = jnp.array([0.0], jnp.float32)

  params = init_params(k_params, latent_dim, input_dim, n_gru, z0_dim)

  # block_rows=16 with n_traj=24 exercises both the row grid (2 steps) and the
  # pad-then-slice path.
  z0_mu, z0_std = encoder_odernn_forward(
      data, tps, params, latent_dim=latent_dim, z0_dim=z0_dim, block_rows=16)
  jax.block_until_ready((z0_mu, z0_std))

  ref_mu, ref_std = _reference(data, params, latent_dim, z0_dim)
  assert z0_mu.shape == (1, n_traj, z0_dim) and z0_std.shape == (1, n_traj, z0_dim)
  assert jnp.allclose(z0_mu, ref_mu, atol=2e-5, rtol=2e-5)
  assert jnp.allclose(z0_std, ref_std, atol=2e-5, rtol=2e-5)

  print("KERNEL_OK")
</pallas_src>

<mosaic_0001>
module attributes {stable_mosaic.version = 11 : i64} {
  func.func @_encoder_kernel(%arg0: i32, %arg1: memref<16x16xf32, #tpu.memory_space<vmem>>, %arg2: memref<16x20xf32, #tpu.memory_space<vmem>>, %arg3: memref<1x20xf32, #tpu.memory_space<vmem>>, %arg4: memref<10x8xf32, #tpu.memory_space<vmem>>, %arg5: memref<1x8xf32, #tpu.memory_space<vmem>>, %arg6: memref<10x16xf32, #tpu.memory_space<vmem>>, %arg7: memref<1x16xf32, #tpu.memory_space<vmem>>, %arg8: memref<16x100xf32, #tpu.memory_space<vmem>>, %arg9: memref<1x100xf32, #tpu.memory_space<vmem>>, %arg10: memref<100x16xf32, #tpu.memory_space<vmem>>, %arg11: memref<1x16xf32, #tpu.memory_space<vmem>>, %arg12: memref<16x16xf32, #tpu.memory_space<vmem>>) attributes {dimension_semantics = [#tpu.dimension_semantics<parallel>], iteration_bounds = array<i64: 2>, scalar_prefetch = 0 : i64, scratch_operands = 0 : i64, tpu.core_type = #tpu.core_type<tc>, window_params = [{transform_indices = @transform_0, window_bounds = array<i64: 16, 16>}, {pipeline_mode = #tpu.pipeline_mode<synchronous>, transform_indices = @transform_1, window_bounds = array<i64: 16, 20>}, {pipeline_mode = #tpu.pipeline_mode<synchronous>, transform_indices = @transform_2, window_bounds = array<i64: 1, 20>}, {pipeline_mode = #tpu.pipeline_mode<synchronous>, transform_indices = @transform_3, window_bounds = array<i64: 10, 8>}, {pipeline_mode = #tpu.pipeline_mode<synchronous>, transform_indices = @transform_4, window_bounds = array<i64: 1, 8>}, {pipeline_mode = #tpu.pipeline_mode<synchronous>, transform_indices = @transform_5, window_bounds = array<i64: 10, 16>}, {pipeline_mode = #tpu.pipeline_mode<synchronous>, transform_indices = @transform_6, window_bounds = array<i64: 1, 16>}, {pipeline_mode = #tpu.pipeline_mode<synchronous>, transform_indices = @transform_7, window_bounds = array<i64: 16, 100>}, {pipeline_mode = #tpu.pipeline_mode<synchronous>, transform_indices = @transform_8, window_bounds = array<i64: 1, 100>}, {pipeline_mode = #tpu.pipeline_mode<synchronous>, transform_indices = @transform_9, window_bounds = array<i64: 100, 16>}, {pipeline_mode = #tpu.pipeline_mode<synchronous>, transform_indices = @transform_10, window_bounds = array<i64: 1, 16>}, {transform_indices = @transform_11, window_bounds = array<i64: 16, 16>}]} {
    %c0 = arith.constant 0 : index
    %c0_0 = arith.constant 0 : index
    %0 = vector.load %arg1[%c0, %c0_0] : memref<16x16xf32, #tpu.memory_space<vmem>>, vector<16x16xf32>
    %1 = vector.extract_strided_slice %0 {offsets = [0, 8], sizes = [16, 8], strides = [1, 1]} : vector<16x16xf32> to vector<16x8xf32>
    %c0_1 = arith.constant 0 : index
    %c0_2 = arith.constant 0 : index
    %2 = vector.load %arg2[%c0_1, %c0_2] : memref<16x20xf32, #tpu.memory_space<vmem>>, vector<16x20xf32>
    %cst = arith.constant dense<0.000000e+00> : vector<16x20xf32>
    %3 = tpu.matmul %0, %2, %cst {dimension_numbers = #tpu.dot_dimension_numbers<[1], [0], [0], [1], [0, 0, 1, 1], [], []>} : vector<16x16xf32>, vector<16x20xf32>, vector<16x20xf32> -> vector<16x20xf32>
    %c0_3 = arith.constant 0 : index
    %c0_4 = arith.constant 0 : index
    %4 = vector.load %arg3[%c0_3, %c0_4] : memref<1x20xf32, #tpu.memory_space<vmem>>, vector<1x20xf32>
    %5 = vector.broadcast %4 : vector<1x20xf32> to vector<16x20xf32>
    %6 = arith.addf %3, %5 : vector<16x20xf32>
    %7 = math.tanh %6 : vector<16x20xf32>
    %8 = vector.extract_strided_slice %7 {offsets = [0, 0], sizes = [16, 10], strides = [1, 1]} : vector<16x20xf32> to vector<16x10xf32>
    %9 = vector.extract_strided_slice %7 {offsets = [0, 10], sizes = [16, 10], strides = [1, 1]} : vector<16x20xf32> to vector<16x10xf32>
    %c0_5 = arith.constant 0 : index
    %c0_6 = arith.constant 0 : index
    %10 = vector.load %arg4[%c0_5, %c0_6] : memref<10x8xf32, #tpu.memory_space<vmem>>, vector<10x8xf32>
    %cst_7 = arith.constant dense<0.000000e+00> : vector<16x8xf32>
    %11 = tpu.matmul %8, %10, %cst_7 {dimension_numbers = #tpu.dot_dimension_numbers<[1], [0], [0], [1], [0, 0, 1, 1], [], []>} : vector<16x10xf32>, vector<10x8xf32>, vector<16x8xf32> -> vector<16x8xf32>
    %c0_8 = arith.constant 0 : index
    %c0_9 = arith.constant 0 : index
    %12 = vector.load %arg5[%c0_8, %c0_9] : memref<1x8xf32, #tpu.memory_space<vmem>>, vector<1x8xf32>
    %13 = vector.broadcast %12 : vector<1x8xf32> to vector<16x8xf32>
    %14 = arith.addf %11, %13 : vector<16x8xf32>
    %15 = arith.negf %14 : vector<16x8xf32>
    %16 = math.exp %15 : vector<16x8xf32>
    %cst_10 = arith.constant 1.000000e+00 : f32
    %17 = vector.broadcast %cst_10 : f32 to vector<16x8xf32>
    %18 = arith.addf %17, %16 : vector<16x8xf32>
    %19 = arith.divf %17, %18 : vector<16x8xf32>
    %c0_11 = arith.constant 0 : index
    %c0_12 = arith.constant 0 : index
    %20 = vector.load %arg6[%c0_11, %c0_12] : memref<10x16xf32, #tpu.memory_space<vmem>>, vector<10x16xf32>
    %cst_13 = arith.constant dense<0.000000e+00> : vector<16x16xf32>
    %21 = tpu.matmul %9, %20, %cst_13 {dimension_numbers = #tpu.dot_dimension_numbers<[1], [0], [0], [1], [0, 0, 1, 1], [], []>} : vector<16x10xf32>, vector<10x16xf32>, vector<16x16xf32> -> vector<16x16xf32>
    %c0_14 = arith.constant 0 : index
    %c0_15 = arith.constant 0 : index
    %22 = vector.load %arg7[%c0_14, %c0_15] : memref<1x16xf32, #tpu.memory_space<vmem>>, vector<1x16xf32>
    %23 = vector.broadcast %22 : vector<1x16xf32> to vector<16x16xf32>
    %24 = arith.addf %21, %23 : vector<16x16xf32>
    %25 = tpu.iota {dimensions = array<i32: 1>} : vector<16x16xi32>
    %c8_i32 = arith.constant 8 : i32
    %26 = vector.broadcast %c8_i32 : i32 to vector<16x16xi32>
    %27 = arith.cmpi sge, %25, %26 : vector<16x16xi32>
    %28 = math.absf %24 : vector<16x16xf32>
    %29 = arith.select %27, %28, %24 : vector<16x16xi1>, vector<16x16xf32>
    %cst_16 = arith.constant 1.000000e+00 : f32
    %30 = vector.broadcast %cst_16 : f32 to vector<16x8xf32>
    %31 = arith.subf %30, %19 : vector<16x8xf32>
    %32 = arith.mulf %1, %31 : vector<16x8xf32>
    %33 = tpu.concatenate %32, %32 in 1 : vector<16x8xf32>, vector<16x8xf32> -> vector<16x16xf32>
    %34 = arith.mulf %33, %29 : vector<16x16xf32>
    %c8_i32_17 = arith.constant 8 : i32
    %35 = vector.broadcast %c8_i32_17 : i32 to vector<16x16xi32>
    %36 = arith.cmpi sge, %25, %35 : vector<16x16xi32>
    %37 = math.absf %34 : vector<16x16xf32>
    %38 = arith.select %36, %37, %34 : vector<16x16xi1>, vector<16x16xf32>
    %c0_18 = arith.constant 0 : index
    %c0_19 = arith.constant 0 : index
    %39 = vector.load %arg8[%c0_18, %c0_19] : memref<16x100xf32, #tpu.memory_space<vmem>>, vector<16x100xf32>
    %cst_20 = arith.constant dense<0.000000e+00> : vector<16x100xf32>
    %40 = tpu.matmul %38, %39, %cst_20 {dimension_numbers = #tpu.dot_dimension_numbers<[1], [0], [0], [1], [0, 0, 1, 1], [], []>} : vector<16x16xf32>, vector<16x100xf32>, vector<16x100xf32> -> vector<16x100xf32>
    %c0_21 = arith.constant 0 : index
    %c0_22 = arith.constant 0 : index
    %41 = vector.load %arg9[%c0_21, %c0_22] : memref<1x100xf32, #tpu.memory_space<vmem>>, vector<1x100xf32>
    %42 = vector.broadcast %41 : vector<1x100xf32> to vector<16x100xf32>
    %43 = arith.addf %40, %42 : vector<16x100xf32>
    %44 = math.tanh %43 : vector<16x100xf32>
    %c0_23 = arith.constant 0 : index
    %c0_24 = arith.constant 0 : index
    %45 = vector.load %arg10[%c0_23, %c0_24] : memref<100x16xf32, #tpu.memory_space<vmem>>, vector<100x16xf32>
    %cst_25 = arith.constant dense<0.000000e+00> : vector<16x16xf32>
    %46 = tpu.matmul %44, %45, %cst_25 {dimension_numbers = #tpu.dot_dimension_numbers<[1], [0], [0], [1], [0, 0, 1, 1], [], []>} : vector<16x100xf32>, vector<100x16xf32>, vector<16x16xf32> -> vector<16x16xf32>
    %c0_26 = arith.constant 0 : index
    %c0_27 = arith.constant 0 : index
    %47 = vector.load %arg11[%c0_26, %c0_27] : memref<1x16xf32, #tpu.memory_space<vmem>>, vector<1x16xf32>
    %48 = vector.broadcast %47 : vector<1x16xf32> to vector<16x16xf32>
    %49 = arith.addf %46, %48 : vector<16x16xf32>
    %50 = tpu.iota {dimensions = array<i32: 1>} : vector<16x16xi32>
    %c8_i32_28 = arith.constant 8 : i32
    %51 = vector.broadcast %c8_i32_28 : i32 to vector<16x16xi32>
    %52 = arith.cmpi sge, %50, %51 : vector<16x16xi32>
    %53 = math.absf %49 : vector<16x16xf32>
    %54 = arith.select %52, %53, %49 : vector<16x16xi1>, vector<16x16xf32>
    %c0_29 = arith.constant 0 : index
    %c0_30 = arith.constant 0 : index
    %55 = vector.load %arg12[%c0_29, %c0_30] : memref<16x16xf32, #tpu.memory_space<vmem>>, vector<16x16xf32>
    tpu.vector_store %arg12[%c0_29, %c0_30], %54 {strides = array<i32>} : memref<16x16xf32, #tpu.memory_space<vmem>>, vector<16x16xf32>,
    return
  }
  func.func @transform_0(%arg0: i32) -> (i32, i32) {
    %c0_i32 = arith.constant 0 : i32
    %c0_i32_0 = arith.constant 0 : i32
    return %arg0, %c0_i32 : i32, i32
  }
  func.func @transform_1(%arg0: i32) -> (i32, i32) {
    %c0_i32 = arith.constant 0 : i32
    %c0_i32_0 = arith.constant 0 : i32
    %c0_i32_1 = arith.constant 0 : i32
    return %c0_i32, %c0_i32_0 : i32, i32
  }
  func.func @transform_2(%arg0: i32) -> (i32, i32) {
    %c0_i32 = arith.constant 0 : i32
    %c0_i32_0 = arith.constant 0 : i32
    %c0_i32_1 = arith.constant 0 : i32
    return %c0_i32, %c0_i32_0 : i32, i32
  }
  func.func @transform_3(%arg0: i32) -> (i32, i32) {
    %c0_i32 = arith.constant 0 : i32
    %c0_i32_0 = arith.constant 0 : i32
    %c0_i32_1 = arith.constant 0 : i32
    return %c0_i32, %c0_i32_0 : i32, i32
  }
  func.func @transform_4(%arg0: i32) -> (i32, i32) {
    %c0_i32 = arith.constant 0 : i32
    %c0_i32_0 = arith.constant 0 : i32
    %c0_i32_1 = arith.constant 0 : i32
    return %c0_i32, %c0_i32_0 : i32, i32
  }
  func.func @transform_5(%arg0: i32) -> (i32, i32) {
    %c0_i32 = arith.constant 0 : i32
    %c0_i32_0 = arith.constant 0 : i32
    %c0_i32_1 = arith.constant 0 : i32
    return %c0_i32, %c0_i32_0 : i32, i32
  }
  func.func @transform_6(%arg0: i32) -> (i32, i32) {
    %c0_i32 = arith.constant 0 : i32
    %c0_i32_0 = arith.constant 0 : i32
    %c0_i32_1 = arith.constant 0 : i32
    return %c0_i32, %c0_i32_0 : i32, i32
  }
  func.func @transform_7(%arg0: i32) -> (i32, i32) {
    %c0_i32 = arith.constant 0 : i32
    %c0_i32_0 = arith.constant 0 : i32
    %c0_i32_1 = arith.constant 0 : i32
    return %c0_i32, %c0_i32_0 : i32, i32
  }
  func.func @transform_8(%arg0: i32) -> (i32, i32) {
    %c0_i32 = arith.constant 0 : i32
    %c0_i32_0 = arith.constant 0 : i32
    %c0_i32_1 = arith.constant 0 : i32
    return %c0_i32, %c0_i32_0 : i32, i32
  }
  func.func @transform_9(%arg0: i32) -> (i32, i32) {
    %c0_i32 = arith.constant 0 : i32
    %c0_i32_0 = arith.constant 0 : i32
    %c0_i32_1 = arith.constant 0 : i32
    return %c0_i32, %c0_i32_0 : i32, i32
  }
  func.func @transform_10(%arg0: i32) -> (i32, i32) {
    %c0_i32 = arith.constant 0 : i32
    %c0_i32_0 = arith.constant 0 : i32
    %c0_i32_1 = arith.constant 0 : i32
    return %c0_i32, %c0_i32_0 : i32, i32
  }
  func.func @transform_11(%arg0: i32) -> (i32, i32) {
    %c0_i32 = arith.constant 0 : i32
    %c0_i32_0 = arith.constant 0 : i32
    return %arg0, %c0_i32 : i32, i32
  }
}

</mosaic_0001>

<bundles_post_ra>
// kernel: tpu_custom_call.1
= control target key start
LH: loop header
LB: loop body
LE: loop exit
PB: predicated region body
PF: predicated region fallthrough
CT: control target
= control target key end

     0   :  { %s1246_s17 = smov 0   ;;  %s1380_s0 = inlined_call_operand.vmem [shape: f32[32,16], index: 0, kind: input, shape index: {}]   ;;  %s1381_s1 = inlined_call_operand.vmem [shape: f32[16,20], index: 1, kind: input, shape index: {}]   ;;  %s1382_s2 = inlined_call_operand.vmem [shape: f32[1,20], index: 2, kind: input, shape index: {}]   ;;  %s1383_s3 = inlined_call_operand.vmem [shape: f32[10,8], index: 3, kind: input, shape index: {}]   ;;  %s1384_s4 = inlined_call_operand.vmem [shape: f32[1,8], index: 4, kind: input, shape index: {}]   ;;  %s1385_s5 = inlined_call_operand.vmem [shape: f32[10,16], index: 5, kind: input, shape index: {}]   ;;  %s1386_s6 = inlined_call_operand.vmem [shape: f32[1,16], index: 6, kind: input, shape index: {}]   ;;  %s1387_s7 = inlined_call_operand.vmem [shape: f32[16,100], index: 7, kind: input, shape index: {}]   ;;  %s1388_s8 = inlined_call_operand.vmem [shape: f32[1,100], index: 8, kind: input, shape index: {}]   ;;  %s1389_s9 = inlined_call_operand.vmem [shape: f32[100,16], index: 9, kind: input, shape index: {}]   ;;  %s1390_s10 = inlined_call_operand.vmem [shape: f32[1,16], index: 10, kind: input, shape index: {}]   ;;  %s1391_s11 = inlined_call_operand.vmem [shape: f32[32,16], index: 11, kind: output, shape index: {}]  }
   0x1 LB: > { %s983_s18 = sadd.s32 4294967295, %s1180_s17   ;;  %p987_p0 = scmp.ge.s32.totalorder %s1180_s17, 1  ;;  %s1180_s17 = sphi %s1246_s17, %s21_s17  }
   0x2   : > { %p338_p1 = scmp.lt.s32.totalorder %s1180_s17, 3 }
   0x4   : > { %p339_p2 = pnand %p987_p0, %p338_p1 }
   0x5   : > { %v392_v0 = vld [vmem:[%s1381_s1] sm:$0xff] (!%p339_p2)  ;;  %v393_v1 = vld [vmem:[%s1381_s1 + $0x8] sm:$0xff] (!%p339_p2)  ;;  %s988_s23 = sshll.u32 (!%p339_p2), %s983_s18, 1  ;;  %vm401_vm0 = vcmask (!%p339_p2), 130048   ;;  %vm501_vm1 = vcmask (!%p339_p2), 1041408   ;;  %vm1182_vm2 = vmmov (!%p339_p2), 1   ;;  %v687_v55 = vlaneseq (!%p339_p2) }
   0x6   : > { %342 = sbr.rel (%p339_p2) target bundleno = 1176 (0x498), region = 64  ;;  %v1102_v2 = vpack.c.bf16 (!%p339_p2), %v393_v1, %v392_v0  ;;  %p379_p3 = scmp.lt.s32.totalorder (!%p339_p2), %s988_s23, 3  ;;  %v485_v5 = vld [vmem:[%s1383_s3] sm:$0xff] (!%p339_p2)  ;;  %v486_v6 = vld [vmem:[%s1383_s3 + $0x8] sm:$0x3] (!%p339_p2)  ;;  %vm1282_vm3 = vmpackc.low (!%p339_p2), %vm501_vm1, %vm1182_vm2  ;;  %vm494_vm4 = vcmask (!%p339_p2), 80896  }
   0x7   : > { %v1106_v7 = vpack.c.bf16 (!%p339_p2), %v486_v6, %v485_v5  ;;  %v992_v9 = vld [vmem:[%s1382_s2] ss:$0 sm:$0xff] (!%p339_p2)  ;;  %v593_v11 = vld [vmem:[%s1385_s5 + $0x8] sm:$0x3] (!%p339_p2)  ;;  %s1183_s20 = smov (!%p339_p2), 118   ;;  %s1184_s25 = smov (!%p339_p2), 8  }
   0x8   : > { %1103 = vmatprep.subr.bf16.mxu1 (!%p339_p2), %v1102_v2  ;;  %v592_v10 = vld [vmem:[%s1385_s5] sm:$0xff] (!%p339_p2)  ;;  %v724_v39 = vld [vmem:[%s1387_s7 + $0x8] sm:$0xff] (!%p339_p2)  ;;  %v817_v44 = vld [vmem:[%s1389_s9 + $0x10] sm:$0xff] (!%p339_p2)  ;;  %s1185_s26 = smov (!%p339_p2), 120   ;;  %v688_v57 = vand.u32 (!%p339_p2), 127, %v687_v55  ;;  %vm714_vm6 = vcmask (!%p339_p2), 64512  }
   0x9   : > { %1105 = vmatpush3.bf16.msra.mxu1 (!%p339_p2), %v1102_v2  ;;  %v1112_v13 = vpack.c.bf16 (!%p339_p2), %v593_v11, %v592_v10  ;;  %v995_v21 = vld [vmem:[%s1384_s4] ss:$0 sm:$0xff] (!%p339_p2)  ;;  %v816_v43 = vld [vmem:[%s1389_s9 + $0x8] sm:$0xff] (!%p339_p2)  ;;  %v818_v47 = vld [vmem:[%s1389_s9 + $0x18] sm:$0xff] (!%p339_p2)  ;;  %vm842_vm7 = vcmask (!%p339_p2), 1043456   ;;  %vm835_vm8 = vcmask (!%p339_p2), 818176  }
   0xa   : > { %1108 = vmatprep.subr.msk.bf16.mxu1 (!%p339_p2), %vm1282_vm3, %v1106_v7  ;;  %v723_v38 = vld [vmem:[%s1387_s7] sm:$0xff] (!%p339_p2)  ;;  %v1126_v48 = vpack.c.bf16 (!%p339_p2), %v818_v47, %v817_v44  ;;  %v820_v50 = vld [vmem:[%s1389_s9 + $0x28] sm:$0xff] (!%p339_p2)  ;;  %vm689_vm5 = vcmp.ge.s32.totalorder (!%p339_p2), %v688_v57, 8  ;;  %v822_v10 = vld [vmem:[%s1389_s9 + $0x38] sm:$0xff] (!%p339_p2) }
   0xb   : > { %v1118_v40 = vpack.c.bf16 (!%p339_p2), %v724_v39, %v723_v38  ;;  %v815_v42 = vld [vmem:[%s1389_s9] sm:$0xff] (!%p339_p2) }
   0xc   : > { %v1122_v46 = vpack.c.bf16 (!%p339_p2), %v816_v43, %v815_v42  ;;  %v819_v49 = vld [vmem:[%s1389_s9 + $0x20] sm:$0xff] (!%p339_p2) }
   0xd   : > { %s1395_s23 = smov (!%p379_p3, %s988_s23), 3  ;;  %v1130_v53 = vpack.c.bf16 %v820_v50, %v819_v49  ;;  %v1001_v54 = vld [vmem:[%s1386_s6] ss:$0 sm:$0xff] }
   0xe   : > { %s989_s24 = sshll.u32 %s1395_s23, 3  ;;  %1123 = vmatprep.subr.bf16.mxu0 %v1122_v46 }
   0xf   : > { %s382_s27 = scalar_lea.vmem %s1380_s0, %s989_s24  ;;  %1125 = vmatpush3.bf16.msra.mxu0 %v1122_v46  ;;  %s388_s14 = scalar_lea.vmem %s1391_s11, %s989_s24 }
  0x10   : > { %v1268_v3 = vld [vmem:[%s382_s27] sm:$0xff]  ;;  %v1270_v4 = vld [vmem:[%s382_s27 + $0x8] sm:$0xff]  ;;  %1127 = vmatprep.subr.bf16.mxu0 %v1126_v48 }
  0x11   : > { %1049 = vmatprep.mubr.msk.f32.mxu1 %vm401_vm0, %v1268_v3 }
  0x12   : > { %1050 = vmatmul.mubr.msk.f32.vlgmr.msra.gmra.mrb[0].mxu1 %vm401_vm0, %v1270_v4 }
  0x13   : > { %1111 = vmatpush3.bf16.msk.msra.mxu1 %vm1282_vm3, %v1106_v7  ;;  %1129 = vmatpush3.bf16.msra.mxu0 %v1126_v48 }
  0x14   : > { %1114 = vmatprep.subr.msk.bf16.mxu1 %vm1282_vm3, %v1112_v13  ;;  %1131 = vmatprep.subr.bf16.mxu0 %v1130_v53 }
  0x17   : > { %1133 = vmatpush3.bf16.msra.mxu0 %v1130_v53 }
  0xe5   : > { %v1051_v12 = vpop.f32.mrb[0].mxu1 }
  0xe6   : > { %v480_v14 = vadd.f32 %v1051_v12, %v992_v9  ;;  %v474_v15 = vpop.f32.mrb[1].mxu1  ;;  %v823_v12 = vld [vmem:[%s1389_s9 + $0x40] sm:$0xff] }
  0xe7   : > { %v475_v16 = vadd.f32 %v992_v9, %v474_v15  ;;  %v821_v9 = vld [vmem:[%s1389_s9 + $0x30] sm:$0xff] }
  0xe8   : > { %v1134_v11 = vpack.c.bf16 %v822_v10, %v821_v9  ;;  %v825_v15 = vld [vmem:[%s1389_s9 + $0x50] sm:$0xff] }
  0xe9   : > { %1158 = vtanh.f32 %v475_v16  ;;  %v826_v16 = vld [vmem:[%s1389_s9 + $0x58] sm:$0xff] }
  0xea   : > { %1160 = vtanh.f32 %v480_v14  ;;  %1135 = vmatprep.subr.bf16.mxu0 %v1134_v11 }
  0xeb   : > { %1137 = vmatpush3.bf16.msra.mxu0 %v1134_v11 }
  0xf3   : > { %v1159_v17 = vpop.eup %1158 }
  0xf4   : > { %v1161_v18 = vpop.eup %1160  ;;  %601 = vrot.lane.b32.xlu0 %v1159_v17, %s1183_s20  ;;  %1056 = vmatprep.mubr.msk.f32.mxu1 %vm494_vm4, %v1159_v17  ;;  %v1142_v17 = vpack.c.bf16 %v826_v16, %v825_v15 }
  0xf5   : > { %1057 = vmatmul.mubr.msk.f32.vlgmr.msra.gmra.mrb[2].mxu1 %vm494_vm4, %v1161_v18 }
  0xf6   : > { %1117 = vmatpush3.bf16.msk.msra.mxu1 %vm1282_vm3, %v1112_v13  ;;  %v824_v13 = vld [vmem:[%s1389_s9 + $0x48] sm:$0xff] }
  0xf7   : > { %1119 = vmatprep.subr.bf16.mxu1 %v1118_v40  ;;  %v1138_v14 = vpack.c.bf16 %v824_v13, %v823_v12 }
  0xf8   : > { %603 = vrot.lane.b32.xlu0 %v1161_v18, %s1183_s20  ;;  %v827_v18 = vld [vmem:[%s1389_s9 + $0x60] sm:$0xf] }
  0xf9   : > { %1139 = vmatprep.subr.bf16.mxu0 %v1138_v14 }
  0xfa   : > { %1141 = vmatpush3.bf16.msra.mxu0 %v1138_v14 }
  0xfb   : > { %1143 = vmatprep.subr.bf16.mxu0 %v1142_v17 }
  0xfe   : > { %1145 = vmatpush3.bf16.msra.mxu0 %v1142_v17 }
  0xff   : > { %1097 = vmatprep.subr.msk.mxu0 %vm842_vm7, %v827_v18 }
 0x102   : > { %1098 = vmatpush3.msk.msra.mxu0 %vm842_vm7, %v827_v18 }
 0x166   : > { %v602_v19 = vpop.permute.xlu0 %601 }
 0x167   : > { %1063 = vmatprep.mubr.msk.f32.mxu1 %vm494_vm4, %v602_v19  ;;  %v1005_v19 = vld [vmem:[%s1388_s8] ss:$0 sm:$0xff] }
 0x16a   : > { %v604_v20 = vpop.permute.xlu0 %603 }
 0x16b   : > { %1064 = vmatmul.mubr.msk.f32.vlgmr.msra.gmra.mrb[4].mxu1 %vm494_vm4, %v604_v20 }
 0x16c   : > { %1121 = vmatpush3.bf16.msra.mxu1 %v1118_v40 }
 0x1c8   : > { %v1058_v22 = vpop.f32.mrb[2].mxu1 }
 0x1c9   : > { %v577_v23 = vadd.f32 %v1058_v22, %v995_v21  ;;  %v571_v24 = vpop.f32.mrb[3].mxu1 }
 0x1ca   : > { %v572_v25 = vadd.f32 %v995_v21, %v571_v24 }
 0x1cb   : > { %v1000_v26 = vmul.f32 -1.442695, %v577_v23 }
 0x1cc   : > { %v999_v27 = vmul.f32 -1.442695, %v572_v25 }
 0x1cd   : > { %1162 = vpow2.f32 %v1000_v26  ;;  %v1008_v26 = vld [vmem:[%s1390_s10] ss:$0 sm:$0xff] }
 0x1ce   : > { %1164 = vpow2.f32 %v999_v27 }
 0x1d7   : > { %v1163_v28 = vpop.eup %1162 }
 0x1d8   : > { %v1165_v29 = vpop.eup %1164  ;;  %v587_v30 = vadd.f32 1.0, %v1163_v28 }
 0x1d9   : > { %v586_v31 = vadd.f32 1.0, %v1165_v29 }
 0x1db   : > { %1166 = vrcp.f32 %v586_v31 }
 0x1dc   : > { %1168 = vrcp.f32 %v587_v30 }
 0x1e5   : > { %v1167_v32 = vpop.eup %1166 }
 0x1e6   : > { %v694_v33 = vsub.f32 1.0, %v1167_v32  ;;  %v1169_v34 = vpop.eup %1168 }
 0x1e7   : > { %v695_v35 = vsub.f32 1.0, %v1169_v34 }
 0x1e8   : > { %698 = vrot.lane.b32.xlu1 %v694_v33, %s1184_s25 }
 0x1ec   : > { %700 = vrot.lane.b32.xlu1 %v695_v35, %s1184_s25 }
 0x23e   : > { %v1065_v36 = vpop.f32.mrb[4].mxu1 }
 0x23f   : > { %v678_v37 = vpop.f32.mrb[5].mxu1  ;;  %v684_v58 = vadd.f32 %v1065_v36, %v1001_v54 }
 0x240   : > { %v679_v56 = vadd.f32 %v1001_v54, %v678_v37 }
 0x241   : > { %v691_v61 = vand.u32 2147483647, %v684_v58 }
 0x242   : > { %v690_v59 = vand.u32 2147483647, %v679_v56 }
 0x244   : > { %v692_v62 = vsel %vm689_vm5, %v690_v59, %v679_v56 }
 0x25a   : > { %v699_v41 = vpop.permute.xlu1 %698 }
 0x25b   : > { %v704_v45 = vmul.f32 %v699_v41, %v1268_v3  ;;  %v693_v3 = vsel %vm689_vm5, %v691_v61, %v684_v58 }
 0x25d   : > { %708 = vrot.lane.b32.xlu0 %v704_v45, %s1185_s26 }
 0x25e   : > { %v701_v51 = vpop.permute.xlu1 %700 }
 0x25f   : > { %v705_v52 = vmul.f32 %v701_v51, %v1270_v4 }
 0x261   : > { %710 = vrot.lane.b32.xlu1 %v705_v52, %s1185_s26 }
 0x2cf   : > { %v709_v60 = vpop.permute.xlu0 %708 }
 0x2d0   : > { %v715_v63 = vsel %vm714_vm6, %v709_v60, %v704_v45 }
 0x2d1   : > { %v717_v0 = vmul.f32 %v715_v63, %v692_v62 }
 0x2d3   : > { %v719_v1 = vand.u32 2147483647, %v717_v0  ;;  %v711_v2 = vpop.permute.xlu1 %710 }
 0x2d4   : > { %v716_v4 = vsel %vm714_vm6, %v711_v2, %v705_v52 }
 0x2d5   : > { %v718_v5 = vmul.f32 %v716_v4, %v693_v3  ;;  %v721_v6 = vsel %vm689_vm5, %v719_v1, %v717_v0 }
 0x2d6   : > { %1070 = vmatprep.mubr.msk.f32.mxu1 %vm401_vm0, %v721_v6 }
 0x2d7   : > { %v720_v7 = vand.u32 2147483647, %v718_v5 }
 0x2d9   : > { %v722_v8 = vsel %vm689_vm5, %v720_v7, %v718_v5 }
 0x2da   : > { %1071 = vmatmul.mubr.msk.f32.vlgmr.msra.gmra.mrb[6].mxu1 %vm401_vm0, %v722_v8 }
 0x3ad   : > { %v1072_v20 = vpop.f32.mrb[6].mxu1 }
 0x3ae   : > { %v810_v21 = vadd.f32 %v1072_v20, %v1005_v19  ;;  %v804_v22 = vpop.f32.mrb[7].mxu1 }
 0x3af   : > { %v805_v23 = vadd.f32 %v1005_v19, %v804_v22 }
 0x3b1   : > { %1170 = vtanh.f32 %v805_v23 }
 0x3b2   : > { %1172 = vtanh.f32 %v810_v21 }
 0x3bb   : > { %v1171_v24 = vpop.eup %1170 }
 0x3bc   : > { %v1173_v25 = vpop.eup %1172  ;;  %1099 = vmatprep.mubr.msk.f32.mxu0 %vm835_vm8, %v1171_v24 }
 0x3bd   : > { %1100 = vmatmul.mubr.msk.f32.vlgmr.msra.gmra.mrb[0].mxu0 %vm835_vm8, %v1173_v25 }
 0x490   : > { %v1101_v27 = vpop.f32.mrb[0].mxu0 }
 0x491   : > { %v918_v28 = vadd.f32 %v1101_v27, %v1008_v26  ;;  %v912_v29 = vpop.f32.mrb[1].mxu0 }
 0x492   : > { %v913_v30 = vadd.f32 %v1008_v26, %v912_v29 }
 0x493   : > { %v922_v31 = vand.u32 2147483647, %v918_v28 }
 0x494   : > { %v921_v32 = vand.u32 2147483647, %v913_v30 }
 0x495   : > { %v924_v34 = vsel %vm689_vm5, %v922_v31, %v918_v28 }
 0x496   : > { %v923_v33 = vsel %vm689_vm5, %v921_v32, %v913_v30  ;;  %926 = vst.msk [vmem:[%s388_s14 + $0x8] sm:$0xff] %vm401_vm0, %v924_v34 }
 0x497   : > { %925 = vst.msk [vmem:[%s388_s14] sm:$0xff] %vm401_vm0, %v923_v33 }
 0x498 PF: > { %s21_s17 = sadd.s32 1, %s1180_s17  }
 0x499   : > { %p18_p4 = scmp.ge.s32.totalorder %s21_s17, 4  }
 0x49b   :  { %20 = sbr.rel (!%p18_p4) target bundleno = 1 (0x1), region = 94 }

</bundles_post_ra>
